<compile_context>
chip_gen: v7x
topology: tpu7x:2x2x1
jax: 0.10.0
libtpu: 0.0.40
codegen_flags: <defaults>
</compile_context>

<pallas_src>
import functools
import math

import jax
import jax.numpy as jnp
from jax import lax
from jax.experimental import pallas as pl
from jax.experimental.pallas import tpu as pltpu


_MAX_TILE_ROWS_DEFAULT = 8192          # 8192 rows x 128 lanes x f32 = 4 MiB per tile
_FUSED_TILE_BYTES = 2 * 1024 * 1024    # streaming tile size inside the fused path
_FUSED_MARGIN_BYTES = 4 * 1024 * 1024  # headroom for params / accumulators / compiler scratch


# ---------------------------------------------------------------------------
# Layout / tiling helpers
# ---------------------------------------------------------------------------
def _vmem_limit_bytes():
    """Generation-aware scoped-VMEM limit: ~half of physical VMEM."""
    cap = 64 * 1024 * 1024
    try:
        info = pltpu.get_tpu_info()
        cap = int(getattr(info, "vmem_capacity_bytes", cap))
    except Exception:
        pass
    # v5e/v6e (128 MiB phys) -> 64 MiB; v7x (64 MiB phys) -> 32 MiB.
    return int(min(max(cap // 2, 32 * 1024 * 1024), 96 * 1024 * 1024))


def _round_up(a, m):
    return ((a + m - 1) // m) * m


def _pick_tile_rows(rows, cap):
    """Tile row count: multiple of 8, <= cap; prefer an exact divisor of rows."""
    cap = max(8, (min(cap, max(rows, 8)) // 8) * 8)
    if rows <= cap:
        return _round_up(rows, 8)
    c = cap
    lo = max(8, cap // 2)
    while c >= lo:                       # divisor near the cap avoids a pad copy
        if rows % c == 0:
            return c
        c -= 8
    return cap                           # ragged: rows are padded up by the wrapper


def _choose_layout(n_rows, d):
    """Pick (lane_width, lane_copies, rows) for the 2-D slab."""
    total = n_rows * d
    if d < 128 and 128 % d == 0 and total % 128 == 0:
        lane, reps = 128, 128 // d       # lane-dense repack: lane L -> feature L % d
    else:
        # TODO(synk): zero-pad D to the next multiple of 128 for lane-dense stores
        # when D is not 128-friendly (masked partial stores otherwise).
        lane, reps = d, 1
    rows = total // lane
    return lane, reps, rows


def _plan_tiling(rows, lane, itemsize, limit, fused_wanted, max_tile_rows):
    """Decide fused-vs-streaming, tile rows and padded row count."""
    row_bytes = lane * itemsize          # native-dtype buffers (f32 lives in vregs)
    cap_stream = max(8, (limit // 8) // row_bytes)   # 2 in + 2 out buffers <= limit/2
    tile_stream = _pick_tile_rows(rows, min(cap_stream, max_tile_rows))

    fused, tile = False, tile_stream
    if fused_wanted:
        cap_fused = max(8, min(_FUSED_TILE_BYTES // row_bytes, cap_stream))
        tile_fused = _pick_tile_rows(rows, min(cap_fused, max_tile_rows))
        padded_fused = _round_up(rows, tile_fused)
        need = (padded_fused + 4 * tile_fused) * row_bytes + _FUSED_MARGIN_BYTES
        if need <= limit:
            fused, tile = True, tile_fused

    padded = _round_up(rows, tile)
    return fused, tile, padded


# ---------------------------------------------------------------------------
# In-kernel math helpers
# ---------------------------------------------------------------------------
def _fold_lane_copies(v, reps, d):
    """(1, reps*d) lane-replicated partial sums -> (1, d) per-feature totals."""
    if reps == 1:
        return v
    out = v[:, 0:d]
    for k in range(1, reps):
        out = out + v[:, k * d:(k + 1) * d]
    return out


def _replicate_lanes(v, reps):
    """(1, d) per-feature row -> (1, reps*d) lane-replicated row."""
    if reps == 1:
        return v
    return jnp.concatenate([v] * reps, axis=-1)


def _finalize_stats(sum_c, sumsq_c, c_lane, lg, beta, rmean, rvar,
                    *, n_samples, d, reps, eps, momentum):
    """Shifted moments -> (scale_lane, shift_lane, ladj, new_rmean, new_rvar)."""
    s = _fold_lane_copies(sum_c, reps, d)          # (1, d)  sum(x - c)
    q = _fold_lane_copies(sumsq_c, reps, d)        # (1, d)  sum((x - c)^2)
    c = c_lane[:, 0:d]                             # (1, d)  per-feature center
    n = jnp.float32(n_samples)
    mean = c + s / n
    # torch.var default is unbiased (N-1); n_samples == 1 gives NaN, like torch.
    var = (q - s * s / n) / jnp.float32(n_samples - 1)
    var = jnp.maximum(var, 0.0)                    # clamp tiny negative f32 residue
    inv_std = lax.rsqrt(var + eps)                 # EUP rsqrt
    scale = jnp.exp(lg) * inv_std                  # fused affine: y = x*scale + shift
    shift = beta - mean * scale
    ladj = lg - 0.5 * jnp.log(var + eps)
    new_rm = momentum * rmean + (1.0 - momentum) * mean
    new_rv = momentum * rvar + (1.0 - momentum) * var
    return (_replicate_lanes(scale, reps), _replicate_lanes(shift, reps),
            ladj, new_rm, new_rv)


# ---------------------------------------------------------------------------
# Kernels
# ---------------------------------------------------------------------------
def _stats_kernel(x_ref, c_ref, lg_ref, beta_ref, rmean_ref, rvar_ref,
                  scale_ref, shift_ref, ladj_ref, new_rmean_ref, new_rvar_ref,
                  sum_acc, sumsq_acc,
                  *, n_samples, d, reps, eps, momentum):
    """Streaming pass 1: shifted-moment accumulation; finalize on last step."""
    i = pl.program_id(0)

    @pl.when(i == 0)
    def _init():
        sum_acc[...] = jnp.zeros_like(sum_acc)
        sumsq_acc[...] = jnp.zeros_like(sumsq_acc)

    xf = x_ref[...].astype(jnp.float32) - c_ref[...]         # (tile_rows, lane)
    sum_acc[...] += jnp.sum(xf, axis=0, keepdims=True)        # (1, lane) f32
    sumsq_acc[...] += jnp.sum(xf * xf, axis=0, keepdims=True)

    @pl.when(i == pl.num_programs(0) - 1)
    def _finalize():
        scale_l, shift_l, ladj, new_rm, new_rv = _finalize_stats(
            sum_acc[...], sumsq_acc[...], c_ref[...],
            lg_ref[...].astype(jnp.float32), beta_ref[...].astype(jnp.float32),
            rmean_ref[...].astype(jnp.float32), rvar_ref[...].astype(jnp.float32),
            n_samples=n_samples, d=d, reps=reps, eps=eps, momentum=momentum)
        scale_ref[...] = scale_l          # already lane-replicated in-kernel
        shift_ref[...] = shift_l
        ladj_ref[...] = ladj
        new_rmean_ref[...] = new_rm
        new_rvar_ref[...] = new_rv


def _affine_kernel(x_ref, scale_ref, shift_ref, y_ref):
    """Streaming pass 2: y = x * scale + shift, native dtype in/out."""
    x = x_ref[...].astype(jnp.float32)
    y_ref[...] = (x * scale_ref[...] + shift_ref[...]).astype(y_ref.dtype)


def _fused_kernel(x_ref, c_ref, lg_ref, beta_ref, rmean_ref, rvar_ref,
                  y_ref, ladj_ref, new_rmean_ref, new_rvar_ref,
                  x_copy, sum_acc, sumsq_acc, scale_s, shift_s,
                  *, nb, n_samples, d, reps, eps, momentum):
    """Fused single-call path: phase 1 (t < nb) stats + stash x tile in VMEM;
    phase 2 (t >= nb) affine out of the VMEM copy (no second HBM read of x)."""
    t = pl.program_id(0)

    @pl.when(t == 0)
    def _init():
        sum_acc[...] = jnp.zeros_like(sum_acc)
        sumsq_acc[...] = jnp.zeros_like(sumsq_acc)

    @pl.when(t < nb)
    def _stats_phase():
        xv = x_ref[...]
        x_copy[t] = xv                                        # keep x resident in VMEM
        xf = xv.astype(jnp.float32) - c_ref[...]
        sum_acc[...] += jnp.sum(xf, axis=0, keepdims=True)
        sumsq_acc[...] += jnp.sum(xf * xf, axis=0, keepdims=True)

    @pl.when(t == nb - 1)
    def _finalize():
        scale_l, shift_l, ladj, new_rm, new_rv = _finalize_stats(
            sum_acc[...], sumsq_acc[...], c_ref[...],
            lg_ref[...].astype(jnp.float32), beta_ref[...].astype(jnp.float32),
            rmean_ref[...].astype(jnp.float32), rvar_ref[...].astype(jnp.float32),
            n_samples=n_samples, d=d, reps=reps, eps=eps, momentum=momentum)
        scale_s[...] = scale_l
        shift_s[...] = shift_l
        ladj_ref[...] = ladj
        new_rmean_ref[...] = new_rm
        new_rvar_ref[...] = new_rv

    @pl.when(t >= nb)
    def _affine_phase():
        j = t - nb
        xv = x_copy[j].astype(jnp.float32)
        y_ref[...] = (xv * scale_s[...] + shift_s[...]).astype(y_ref.dtype)


# ---------------------------------------------------------------------------
# Wrapper (flatten / repack / pad / param plumbing / running-stat EMA)
# ---------------------------------------------------------------------------
def running_average_batch_norm(x, log_gamma, beta, running_mean, running_var,
                               *, momentum=0.9, eps=1e-5, training=True,
                               max_tile_rows=_MAX_TILE_ROWS_DEFAULT,
                               allow_fused=True):
    """Functional forward of RunningAverageBatchNorm.

    Returns (y, log_abs_det_jacobian, new_running_mean, new_running_var).
    y and ladj have the same shape as x (ladj is a lazy broadcast of the
    per-feature values, mirroring torch's .expand_as view).
    """
    orig_shape = x.shape
    d = orig_shape[-1]
    n_rows = math.prod(orig_shape[:-1]) if len(orig_shape) > 1 else 1
    itemsize = jnp.dtype(x.dtype).itemsize

    lane, reps, rows = _choose_layout(n_rows, d)
    limit = _vmem_limit_bytes()
    fused, tile_rows, padded_rows = _plan_tiling(
        rows, lane, itemsize, limit, training and allow_fused, max_tile_rows)
    nb = padded_rows // tile_rows

    xr = x.reshape(rows, lane)                      # flat reinterpretation, no copy
    # Per-feature center (first sample): moments are accumulated about it for
    # numerical stability, and it is also the pad-row value so padded rows
    # contribute exactly zero to sum / sumsq.
    c_feat = x.reshape(-1, d)[0].astype(x.dtype)                     # (d,)
    pad_row = jnp.tile(c_feat, reps).reshape(1, lane)                # x dtype
    c_lane = pad_row.astype(jnp.float32)                             # (1, lane) f32
    if padded_rows > rows:
        xr = jnp.concatenate(
            [xr, jnp.broadcast_to(pad_row, (padded_rows - rows, lane))], axis=0)

    row_spec = pl.BlockSpec((tile_rows, lane), lambda i: (i, 0))
    feat_spec = pl.BlockSpec((1, d), lambda i: (0, 0))       # resident across grid
    lane_spec = pl.BlockSpec((1, lane), lambda i: (0, 0))    # resident across grid
    cp_reduce = pltpu.CompilerParams(dimension_semantics=("arbitrary",),
                                     vmem_limit_bytes=limit)
    cp_parallel = pltpu.CompilerParams(dimension_semantics=("parallel",),
                                       vmem_limit_bytes=limit)

    lg2 = log_gamma.reshape(1, d).astype(jnp.float32)
    b2 = beta.reshape(1, d).astype(jnp.float32)
    rm2 = running_mean.reshape(1, d).astype(jnp.float32)
    rv2 = running_var.reshape(1, d).astype(jnp.float32)

    feat_shape = jax.ShapeDtypeStruct((1, d), jnp.float32)
    lane_shape = jax.ShapeDtypeStruct((1, lane), jnp.float32)
    y_shape = jax.ShapeDtypeStruct((padded_rows, lane), x.dtype)

    if training and fused:
        # Single fused pallas_call: 2*nb grid steps, x read from HBM once.
        kern = functools.partial(_fused_kernel, nb=nb, n_samples=n_rows, d=d,
                                 reps=reps, eps=float(eps), momentum=float(momentum))
        x_spec = pl.BlockSpec((tile_rows, lane),
                              lambda t: (jnp.minimum(t, nb - 1), 0))
        y_spec = pl.BlockSpec((tile_rows, lane),
                              lambda t: (jnp.maximum(t - nb, 0), 0))
        y2, ladj_f, new_rm2, new_rv2 = pl.pallas_call(
            kern,
            grid=(2 * nb,),
            in_specs=[x_spec, lane_spec, feat_spec, feat_spec, feat_spec, feat_spec],
            out_specs=(y_spec, feat_spec, feat_spec, feat_spec),
            out_shape=(y_shape, feat_shape, feat_shape, feat_shape),
            scratch_shapes=[pltpu.VMEM((nb, tile_rows, lane), x.dtype),
                            pltpu.VMEM((1, lane), jnp.float32),
                            pltpu.VMEM((1, lane), jnp.float32),
                            pltpu.VMEM((1, lane), jnp.float32),
                            pltpu.VMEM((1, lane), jnp.float32)],
            compiler_params=cp_reduce,
        )(xr, c_lane, lg2, b2, rm2, rv2)
        new_rmean = new_rm2.reshape(d).astype(running_mean.dtype)
        new_rvar = new_rv2.reshape(d).astype(running_var.dtype)
    else:
        if training:
            # Streaming pass 1: batch statistics + fused scale/shift + EMA.
            kern = functools.partial(_stats_kernel, n_samples=n_rows, d=d, reps=reps,
                                     eps=float(eps), momentum=float(momentum))
            scale_l, shift_l, ladj_f, new_rm2, new_rv2 = pl.pallas_call(
                kern,
                grid=(nb,),
                in_specs=[row_spec, lane_spec, feat_spec, feat_spec, feat_spec, feat_spec],
                out_specs=(lane_spec, lane_spec, feat_spec, feat_spec, feat_spec),
                out_shape=(lane_shape, lane_shape, feat_shape, feat_shape, feat_shape),
                scratch_shapes=[pltpu.VMEM((1, lane), jnp.float32),
                                pltpu.VMEM((1, lane), jnp.float32)],
                compiler_params=cp_reduce,
            )(xr, c_lane, lg2, b2, rm2, rv2)
            new_rmean = new_rm2.reshape(d).astype(running_mean.dtype)
            new_rvar = new_rv2.reshape(d).astype(running_var.dtype)
        else:
            # Eval: scale/shift/ladj are D-sized; compute in plain JAX.
            lg = log_gamma.astype(jnp.float32)
            bt = beta.astype(jnp.float32)
            rm = running_mean.astype(jnp.float32)
            rv = running_var.astype(jnp.float32)
            inv_std = lax.rsqrt(rv + eps)
            scale_1d = jnp.exp(lg) * inv_std
            shift_1d = bt - rm * scale_1d
            ladj_f = (lg - 0.5 * jnp.log(rv + eps)).reshape(1, d)
            scale_l = jnp.tile(scale_1d, reps).reshape(1, lane)
            shift_l = jnp.tile(shift_1d, reps).reshape(1, lane)
            new_rmean = running_mean
            new_rvar = running_var

        # Streaming pass 2: y = x*scale + shift (row tiles independent -> parallel).
        y2 = pl.pallas_call(
            _affine_kernel,
            grid=(nb,),
            in_specs=[row_spec, lane_spec, lane_spec],
            out_specs=row_spec,
            out_shape=y_shape,
            compiler_params=cp_parallel,
        )(xr, scale_l, shift_l)

    if padded_rows > rows:
        y2 = y2[:rows]
    y = y2.reshape(orig_shape)
    # torch's .expand_as is a view; jnp.broadcast_to stays lazy under jit, so the
    # full (N, D) ladj is only materialized if a consumer forces it.
    ladj = jnp.broadcast_to(ladj_f.reshape(d), orig_shape)
    return y, ladj, new_rmean, new_rvar


# ---------------------------------------------------------------------------
# Pure-JAX reference for verification
# ---------------------------------------------------------------------------
def _reference(x, log_gamma, beta, running_mean, running_var,
               *, momentum=0.9, eps=1e-5, training=True):
    d = x.shape[-1]
    xf = x.reshape(-1, d).astype(jnp.float32)
    if training:
        mean = xf.mean(0)
        var = xf.var(0, ddof=1)
        new_rmean = running_mean * momentum + mean * (1 - momentum)
        new_rvar = running_var * momentum + var * (1 - momentum)
    else:
        mean, var = running_mean.astype(jnp.float32), running_var.astype(jnp.float32)
        new_rmean, new_rvar = running_mean, running_var
    x_hat = (x.astype(jnp.float32) - mean) / jnp.sqrt(var + eps)
    y = (jnp.exp(log_gamma.astype(jnp.float32)) * x_hat
         + beta.astype(jnp.float32)).astype(x.dtype)
    ladj = jnp.broadcast_to(log_gamma.astype(jnp.float32)
                            - 0.5 * jnp.log(var + eps), x.shape)
    return y, ladj, new_rmean, new_rvar


if __name__ == "__main__":
    key = jax.random.PRNGKey(0)
    ks = jax.random.split(key, 10)

    # ------------------------------------------------------------------
    # Test 1: module-style shapes (batch=2, seq=8, hidden=input_size=32), f32.
    # Exercises lane-dense repack (lane=128, reps=4), row padding (4 -> 8 rows)
    # and the fused single-call path. Also checks eval mode.
    # ------------------------------------------------------------------
    B, S, D = 2, 8, 32
    x = jax.random.normal(ks[0], (B, S, D), dtype=jnp.float32) * 2.0 + 0.5
    log_gamma = jax.random.normal(ks[1], (D,), jnp.float32) * 0.1
    beta = jax.random.normal(ks[2], (D,), jnp.float32) * 0.2
    running_mean = jnp.zeros((D,), jnp.float32)
    running_var = jnp.ones((D,), jnp.float32)

    y, ladj, rmean, rvar = running_average_batch_norm(
        x, log_gamma, beta, running_mean, running_var,
        momentum=0.9, eps=1e-5, training=True)
    jax.block_until_ready((y, ladj, rmean, rvar))
    y_r, ladj_r, rmean_r, rvar_r = _reference(
        x, log_gamma, beta, running_mean, running_var,
        momentum=0.9, eps=1e-5, training=True)
    assert jnp.allclose(y, y_r, atol=2e-3, rtol=2e-3)
    assert jnp.allclose(ladj, ladj_r, atol=2e-3, rtol=2e-3)
    assert jnp.allclose(rmean, rmean_r, atol=1e-3, rtol=1e-3)
    assert jnp.allclose(rvar, rvar_r, atol=1e-3, rtol=1e-3)

    y_e, ladj_e, _, _ = running_average_batch_norm(
        x, log_gamma, beta, rmean, rvar, momentum=0.9, eps=1e-5, training=False)
    jax.block_until_ready((y_e, ladj_e))
    y_er, ladj_er, _, _ = _reference(
        x, log_gamma, beta, rmean, rvar, momentum=0.9, eps=1e-5, training=False)
    assert jnp.allclose(y_e, y_er, atol=2e-3, rtol=2e-3)
    assert jnp.allclose(ladj_e, ladj_er, atol=2e-3, rtol=2e-3)

    # ------------------------------------------------------------------
    # Test 2: larger D (no repack, lane=256), streaming two-pass path with a
    # forced multi-step grid (allow_fused=False, max_tile_rows=64 -> 4 tiles).
    # ------------------------------------------------------------------
    B2, S2, D2 = 4, 64, 256
    x2 = jax.random.normal(ks[3], (B2, S2, D2), dtype=jnp.float32) * 1.5 + 0.3
    lg2 = jax.random.normal(ks[4], (D2,), jnp.float32) * 0.1
    b2 = jax.random.normal(ks[5], (D2,), jnp.float32) * 0.2
    rm2 = jax.random.normal(ks[6], (D2,), jnp.float32) * 0.1
    rv2 = jnp.abs(jax.random.normal(ks[7], (D2,), jnp.float32)) + 0.5

    y2o, ladj2o, rmean2, rvar2 = running_average_batch_norm(
        x2, lg2, b2, rm2, rv2, momentum=0.9, eps=1e-5, training=True,
        max_tile_rows=64, allow_fused=False)
    jax.block_until_ready((y2o, ladj2o, rmean2, rvar2))
    y2r, ladj2r, rmean2r, rvar2r = _reference(
        x2, lg2, b2, rm2, rv2, momentum=0.9, eps=1e-5, training=True)
    assert jnp.allclose(y2o, y2r, atol=2e-3, rtol=2e-3)
    assert jnp.allclose(ladj2o, ladj2r, atol=2e-3, rtol=2e-3)
    assert jnp.allclose(rmean2, rmean2r, atol=1e-3, rtol=1e-3)
    assert jnp.allclose(rvar2, rvar2r, atol=1e-3, rtol=1e-3)

    # ------------------------------------------------------------------
    # Test 3: bf16 input, fused path with a multi-tile grid (nb=4, 8 steps).
    # ------------------------------------------------------------------
    B3, S3, D3 = 8, 32, 32
    x3 = (jax.random.normal(ks[8], (B3, S3, D3), jnp.float32) * 1.5
          + 0.25).astype(jnp.bfloat16)
    lg3 = jnp.zeros((D3,), jnp.float32)
    b3 = jnp.zeros((D3,), jnp.float32)
    rm3 = jnp.zeros((D3,), jnp.float32)
    rv3 = jnp.ones((D3,), jnp.float32)

    y3o, ladj3o, rmean3, rvar3 = running_average_batch_norm(
        x3, lg3, b3, rm3, rv3, momentum=0.9, eps=1e-5, training=True,
        max_tile_rows=16, allow_fused=True)
    jax.block_until_ready((y3o, ladj3o, rmean3, rvar3))
    y3r, ladj3r, rmean3r, rvar3r = _reference(
        x3, lg3, b3, rm3, rv3, momentum=0.9, eps=1e-5, training=True)
    assert jnp.allclose(y3o.astype(jnp.float32), y3r.astype(jnp.float32),
                        atol=6e-2, rtol=6e-2)
    assert jnp.allclose(ladj3o, ladj3r, atol=5e-3, rtol=5e-3)
    assert jnp.allclose(rmean3, rmean3r, atol=5e-3, rtol=5e-3)
    assert jnp.allclose(rvar3, rvar3r, atol=5e-3, rtol=5e-3)

    print("KERNEL_OK")
</pallas_src>

<mosaic_0001>
module attributes {stable_mosaic.version = 11 : i64} {
  func.func @_fused_kernel(%arg0: i32, %arg1: memref<8x128xf32, #tpu.memory_space<vmem>>, %arg2: memref<1x128xf32, #tpu.memory_space<vmem>>, %arg3: memref<1x32xf32, #tpu.memory_space<vmem>>, %arg4: memref<1x32xf32, #tpu.memory_space<vmem>>, %arg5: memref<1x32xf32, #tpu.memory_space<vmem>>, %arg6: memref<1x32xf32, #tpu.memory_space<vmem>>, %arg7: memref<8x128xf32, #tpu.memory_space<vmem>>, %arg8: memref<1x32xf32, #tpu.memory_space<vmem>>, %arg9: memref<1x32xf32, #tpu.memory_space<vmem>>, %arg10: memref<1x32xf32, #tpu.memory_space<vmem>>, %arg11: memref<1x8x128xf32, #tpu.memory_space<vmem>>, %arg12: memref<1x128xf32, #tpu.memory_space<vmem>>, %arg13: memref<1x128xf32, #tpu.memory_space<vmem>>, %arg14: memref<1x128xf32, #tpu.memory_space<vmem>>, %arg15: memref<1x128xf32, #tpu.memory_space<vmem>>) attributes {dimension_semantics = [#tpu.dimension_semantics<arbitrary>], iteration_bounds = array<i64: 2>, scalar_prefetch = 0 : i64, scratch_operands = 5 : i64, tpu.core_type = #tpu.core_type<tc>, window_params = [{transform_indices = @transform_0, window_bounds = array<i64: 8, 128>}, {pipeline_mode = #tpu.pipeline_mode<synchronous>, transform_indices = @transform_1, window_bounds = array<i64: 1, 128>}, {pipeline_mode = #tpu.pipeline_mode<synchronous>, transform_indices = @transform_2, window_bounds = array<i64: 1, 32>}, {pipeline_mode = #tpu.pipeline_mode<synchronous>, transform_indices = @transform_3, window_bounds = array<i64: 1, 32>}, {pipeline_mode = #tpu.pipeline_mode<synchronous>, transform_indices = @transform_4, window_bounds = array<i64: 1, 32>}, {pipeline_mode = #tpu.pipeline_mode<synchronous>, transform_indices = @transform_5, window_bounds = array<i64: 1, 32>}, {transform_indices = @transform_6, window_bounds = array<i64: 8, 128>}, {pipeline_mode = #tpu.pipeline_mode<synchronous>, transform_indices = @transform_7, window_bounds = array<i64: 1, 32>}, {pipeline_mode = #tpu.pipeline_mode<synchronous>, transform_indices = @transform_8, window_bounds = array<i64: 1, 32>}, {pipeline_mode = #tpu.pipeline_mode<synchronous>, transform_indices = @transform_9, window_bounds = array<i64: 1, 32>}]} {
    %c0_i32 = arith.constant 0 : i32
    %0 = arith.cmpi eq, %arg0, %c0_i32 : i32
    %1 = arith.extui %0 : i1 to i32
    %c0_i32_0 = arith.constant 0 : i32
    %2 = arith.cmpi ne, %1, %c0_i32_0 : i32
    scf.if %2 {
      %cst = arith.constant 0.000000e+00 : f32
      %12 = vector.broadcast %cst : f32 to vector<1x128xf32>
      %c0 = arith.constant 0 : index
      %c0_6 = arith.constant 0 : index
      %13 = vector.load %arg12[%c0, %c0_6] : memref<1x128xf32, #tpu.memory_space<vmem>>, vector<1x128xf32>
      tpu.vector_store %arg12[%c0, %c0_6], %12 {strides = array<i32>} : memref<1x128xf32, #tpu.memory_space<vmem>>, vector<1x128xf32>,
      %cst_7 = arith.constant 0.000000e+00 : f32
      %14 = vector.broadcast %cst_7 : f32 to vector<1x128xf32>
      %c0_8 = arith.constant 0 : index
      %c0_9 = arith.constant 0 : index
      %15 = vector.load %arg13[%c0_8, %c0_9] : memref<1x128xf32, #tpu.memory_space<vmem>>, vector<1x128xf32>
      tpu.vector_store %arg13[%c0_8, %c0_9], %14 {strides = array<i32>} : memref<1x128xf32, #tpu.memory_space<vmem>>, vector<1x128xf32>,
    } else {
    }
    %c1_i32 = arith.constant 1 : i32
    %3 = arith.cmpi slt, %arg0, %c1_i32 : i32
    %4 = arith.extui %3 : i1 to i32
    %c0_i32_1 = arith.constant 0 : i32
    %5 = arith.cmpi ne, %4, %c0_i32_1 : i32
    scf.if %5 {
      %c0 = arith.constant 0 : index
      %c0_6 = arith.constant 0 : index
      %12 = vector.load %arg1[%c0, %c0_6] : memref<8x128xf32, #tpu.memory_space<vmem>>, vector<8x128xf32>
      %13 = arith.index_cast %arg0 : i32 to index
      %c0_7 = arith.constant 0 : index
      %c0_8 = arith.constant 0 : index
      %14 = vector.load %arg11[%13, %c0_7, %c0_8] : memref<1x8x128xf32, #tpu.memory_space<vmem>>, vector<1x8x128xf32>
      %15 = vector.shape_cast %14 : vector<1x8x128xf32> to vector<8x128xf32>
      %16 = vector.shape_cast %12 : vector<8x128xf32> to vector<1x8x128xf32>
      tpu.vector_store %arg11[%13, %c0_7, %c0_8], %16 {strides = array<i32>} : memref<1x8x128xf32, #tpu.memory_space<vmem>>, vector<1x8x128xf32>,
      %c0_9 = arith.constant 0 : index
      %c0_10 = arith.constant 0 : index
      %17 = vector.load %arg2[%c0_9, %c0_10] : memref<1x128xf32, #tpu.memory_space<vmem>>, vector<1x128xf32>
      %18 = vector.broadcast %17 : vector<1x128xf32> to vector<8x128xf32>
      %19 = arith.subf %12, %18 : vector<8x128xf32>
      %c0_11 = arith.constant 0 : index
      %c0_12 = arith.constant 0 : index
      %20 = vector.load %arg12[%c0_11, %c0_12] : memref<1x128xf32, #tpu.memory_space<vmem>>, vector<1x128xf32>
      %cst = arith.constant dense<0.000000e+00> : vector<128xf32>
      %21 = vector.multi_reduction <add>, %19, %cst [0] : vector<8x128xf32> to vector<128xf32>
      %22 = vector.shape_cast %21 : vector<128xf32> to vector<1x128xf32>
      %23 = arith.addf %20, %22 : vector<1x128xf32>
      %c0_13 = arith.constant 0 : index
      %c0_14 = arith.constant 0 : index
      %24 = vector.load %arg12[%c0_13, %c0_14] : memref<1x128xf32, #tpu.memory_space<vmem>>, vector<1x128xf32>
      tpu.vector_store %arg12[%c0_13, %c0_14], %23 {strides = array<i32>} : memref<1x128xf32, #tpu.memory_space<vmem>>, vector<1x128xf32>,
      %c0_15 = arith.constant 0 : index
      %c0_16 = arith.constant 0 : index
      %25 = vector.load %arg13[%c0_15, %c0_16] : memref<1x128xf32, #tpu.memory_space<vmem>>, vector<1x128xf32>
      %26 = arith.mulf %19, %19 : vector<8x128xf32>
      %cst_17 = arith.constant dense<0.000000e+00> : vector<128xf32>
      %27 = vector.multi_reduction <add>, %26, %cst_17 [0] : vector<8x128xf32> to vector<128xf32>
      %28 = vector.shape_cast %27 : vector<128xf32> to vector<1x128xf32>
      %29 = arith.addf %25, %28 : vector<1x128xf32>
      %c0_18 = arith.constant 0 : index
      %c0_19 = arith.constant 0 : index
      %30 = vector.load %arg13[%c0_18, %c0_19] : memref<1x128xf32, #tpu.memory_space<vmem>>, vector<1x128xf32>
      tpu.vector_store %arg13[%c0_18, %c0_19], %29 {strides = array<i32>} : memref<1x128xf32, #tpu.memory_space<vmem>>, vector<1x128xf32>,
    } else {
    }
    %c0_i32_2 = arith.constant 0 : i32
    %6 = arith.cmpi eq, %arg0, %c0_i32_2 : i32
    %7 = arith.extui %6 : i1 to i32
    %c0_i32_3 = arith.constant 0 : i32
    %8 = arith.cmpi ne, %7, %c0_i32_3 : i32
    scf.if %8 {
      %c0 = arith.constant 0 : index
      %c0_6 = arith.constant 0 : index
      %12 = vector.load %arg12[%c0, %c0_6] : memref<1x128xf32, #tpu.memory_space<vmem>>, vector<1x128xf32>
      %c0_7 = arith.constant 0 : index
      %c0_8 = arith.constant 0 : index
      %13 = vector.load %arg13[%c0_7, %c0_8] : memref<1x128xf32, #tpu.memory_space<vmem>>, vector<1x128xf32>
      %c0_9 = arith.constant 0 : index
      %c0_10 = arith.constant 0 : index
      %14 = vector.load %arg2[%c0_9, %c0_10] : memref<1x128xf32, #tpu.memory_space<vmem>>, vector<1x128xf32>
      %c0_11 = arith.constant 0 : index
      %c0_12 = arith.constant 0 : index
      %15 = vector.load %arg3[%c0_11, %c0_12] : memref<1x32xf32, #tpu.memory_space<vmem>>, vector<1x32xf32>
      %c0_13 = arith.constant 0 : index
      %c0_14 = arith.constant 0 : index
      %16 = vector.load %arg4[%c0_13, %c0_14] : memref<1x32xf32, #tpu.memory_space<vmem>>, vector<1x32xf32>
      %c0_15 = arith.constant 0 : index
      %c0_16 = arith.constant 0 : index
      %17 = vector.load %arg5[%c0_15, %c0_16] : memref<1x32xf32, #tpu.memory_space<vmem>>, vector<1x32xf32>
      %c0_17 = arith.constant 0 : index
      %c0_18 = arith.constant 0 : index
      %18 = vector.load %arg6[%c0_17, %c0_18] : memref<1x32xf32, #tpu.memory_space<vmem>>, vector<1x32xf32>
      %19 = vector.extract_strided_slice %12 {offsets = [0, 0], sizes = [1, 32], strides = [1, 1]} : vector<1x128xf32> to vector<1x32xf32>
      %20 = vector.extract_strided_slice %12 {offsets = [0, 32], sizes = [1, 32], strides = [1, 1]} : vector<1x128xf32> to vector<1x32xf32>
      %21 = arith.addf %19, %20 : vector<1x32xf32>
      %22 = vector.extract_strided_slice %12 {offsets = [0, 64], sizes = [1, 32], strides = [1, 1]} : vector<1x128xf32> to vector<1x32xf32>
      %23 = arith.addf %21, %22 : vector<1x32xf32>
      %24 = vector.extract_strided_slice %12 {offsets = [0, 96], sizes = [1, 32], strides = [1, 1]} : vector<1x128xf32> to vector<1x32xf32>
      %25 = arith.addf %23, %24 : vector<1x32xf32>
      %26 = vector.extract_strided_slice %13 {offsets = [0, 0], sizes = [1, 32], strides = [1, 1]} : vector<1x128xf32> to vector<1x32xf32>
      %27 = vector.extract_strided_slice %13 {offsets = [0, 32], sizes = [1, 32], strides = [1, 1]} : vector<1x128xf32> to vector<1x32xf32>
      %28 = arith.addf %26, %27 : vector<1x32xf32>
      %29 = vector.extract_strided_slice %13 {offsets = [0, 64], sizes = [1, 32], strides = [1, 1]} : vector<1x128xf32> to vector<1x32xf32>
      %30 = arith.addf %28, %29 : vector<1x32xf32>
      %31 = vector.extract_strided_slice %13 {offsets = [0, 96], sizes = [1, 32], strides = [1, 1]} : vector<1x128xf32> to vector<1x32xf32>
      %32 = arith.addf %30, %31 : vector<1x32xf32>
      %33 = vector.extract_strided_slice %14 {offsets = [0, 0], sizes = [1, 32], strides = [1, 1]} : vector<1x128xf32> to vector<1x32xf32>
      %cst = arith.constant 1.600000e+01 : f32
      %34 = vector.broadcast %cst : f32 to vector<1x32xf32>
      %35 = arith.divf %25, %34 : vector<1x32xf32>
      %36 = arith.addf %33, %35 : vector<1x32xf32>
      %37 = arith.mulf %25, %25 : vector<1x32xf32>
      %cst_19 = arith.constant 1.600000e+01 : f32
      %38 = vector.broadcast %cst_19 : f32 to vector<1x32xf32>
      %39 = arith.divf %37, %38 : vector<1x32xf32>
      %40 = arith.subf %32, %39 : vector<1x32xf32>
      %cst_20 = arith.constant 1.500000e+01 : f32
      %41 = vector.broadcast %cst_20 : f32 to vector<1x32xf32>
      %42 = arith.divf %40, %41 : vector<1x32xf32>
      %cst_21 = arith.constant 0.000000e+00 : f32
      %43 = vector.broadcast %cst_21 : f32 to vector<1x32xf32>
      %44 = arith.maximumf %42, %43 : vector<1x32xf32>
      %cst_22 = arith.constant 9.99999974E-6 : f32
      %45 = vector.broadcast %cst_22 : f32 to vector<1x32xf32>
      %46 = arith.addf %44, %45 : vector<1x32xf32>
      %47 = math.rsqrt %46 : vector<1x32xf32>
      %48 = math.exp %15 : vector<1x32xf32>
      %49 = arith.mulf %48, %47 : vector<1x32xf32>
      %50 = arith.mulf %36, %49 : vector<1x32xf32>
      %51 = arith.subf %16, %50 : vector<1x32xf32>
      %cst_23 = arith.constant 9.99999974E-6 : f32
      %52 = vector.broadcast %cst_23 : f32 to vector<1x32xf32>
      %53 = arith.addf %44, %52 : vector<1x32xf32>
      %54 = math.log %53 : vector<1x32xf32>
      %cst_24 = arith.constant 5.000000e-01 : f32
      %55 = vector.broadcast %cst_24 : f32 to vector<1x32xf32>
      %56 = arith.mulf %55, %54 : vector<1x32xf32>
      %57 = arith.subf %15, %56 : vector<1x32xf32>
      %cst_25 = arith.constant 0.899999976 : f32
      %58 = vector.broadcast %cst_25 : f32 to vector<1x32xf32>
      %59 = arith.mulf %58, %17 : vector<1x32xf32>
      %cst_26 = arith.constant 1.000000e-01 : f32
      %60 = vector.broadcast %cst_26 : f32 to vector<1x32xf32>
      %61 = arith.mulf %60, %36 : vector<1x32xf32>
      %62 = arith.addf %59, %61 : vector<1x32xf32>
      %cst_27 = arith.constant 0.899999976 : f32
      %63 = vector.broadcast %cst_27 : f32 to vector<1x32xf32>
      %64 = arith.mulf %63, %18 : vector<1x32xf32>
      %cst_28 = arith.constant 1.000000e-01 : f32
      %65 = vector.broadcast %cst_28 : f32 to vector<1x32xf32>
      %66 = arith.mulf %65, %44 : vector<1x32xf32>
      %67 = arith.addf %64, %66 : vector<1x32xf32>
      %68 = tpu.concatenate %49, %49, %49, %49 in 1 : vector<1x32xf32>, vector<1x32xf32>, vector<1x32xf32>, vector<1x32xf32> -> vector<1x128xf32>
      %69 = tpu.concatenate %51, %51, %51, %51 in 1 : vector<1x32xf32>, vector<1x32xf32>, vector<1x32xf32>, vector<1x32xf32> -> vector<1x128xf32>
      %c0_29 = arith.constant 0 : index
      %c0_30 = arith.constant 0 : index
      %70 = vector.load %arg14[%c0_29, %c0_30] : memref<1x128xf32, #tpu.memory_space<vmem>>, vector<1x128xf32>
      tpu.vector_store %arg14[%c0_29, %c0_30], %68 {strides = array<i32>} : memref<1x128xf32, #tpu.memory_space<vmem>>, vector<1x128xf32>,
      %c0_31 = arith.constant 0 : index
      %c0_32 = arith.constant 0 : index
      %71 = vector.load %arg15[%c0_31, %c0_32] : memref<1x128xf32, #tpu.memory_space<vmem>>, vector<1x128xf32>
      tpu.vector_store %arg15[%c0_31, %c0_32], %69 {strides = array<i32>} : memref<1x128xf32, #tpu.memory_space<vmem>>, vector<1x128xf32>,
      %c0_33 = arith.constant 0 : index
      %c0_34 = arith.constant 0 : index
      %72 = vector.load %arg8[%c0_33, %c0_34] : memref<1x32xf32, #tpu.memory_space<vmem>>, vector<1x32xf32>
      tpu.vector_store %arg8[%c0_33, %c0_34], %57 {strides = array<i32>} : memref<1x32xf32, #tpu.memory_space<vmem>>, vector<1x32xf32>,
      %c0_35 = arith.constant 0 : index
      %c0_36 = arith.constant 0 : index
      %73 = vector.load %arg9[%c0_35, %c0_36] : memref<1x32xf32, #tpu.memory_space<vmem>>, vector<1x32xf32>
      tpu.vector_store %arg9[%c0_35, %c0_36], %62 {strides = array<i32>} : memref<1x32xf32, #tpu.memory_space<vmem>>, vector<1x32xf32>,
      %c0_37 = arith.constant 0 : index
      %c0_38 = arith.constant 0 : index
      %74 = vector.load %arg10[%c0_37, %c0_38] : memref<1x32xf32, #tpu.memory_space<vmem>>, vector<1x32xf32>
      tpu.vector_store %arg10[%c0_37, %c0_38], %67 {strides = array<i32>} : memref<1x32xf32, #tpu.memory_space<vmem>>, vector<1x32xf32>,
    } else {
    }
    %c1_i32_4 = arith.constant 1 : i32
    %9 = arith.cmpi sge, %arg0, %c1_i32_4 : i32
    %10 = arith.extui %9 : i1 to i32
    %c0_i32_5 = arith.constant 0 : i32
    %11 = arith.cmpi ne, %10, %c0_i32_5 : i32
    scf.if %11 {
      %c1_i32_6 = arith.constant 1 : i32
      %12 = arith.subi %arg0, %c1_i32_6 : i32
      %13 = arith.index_cast %12 : i32 to index
      %c0 = arith.constant 0 : index
      %c0_7 = arith.constant 0 : index
      %14 = vector.load %arg11[%13, %c0, %c0_7] : memref<1x8x128xf32, #tpu.memory_space<vmem>>, vector<1x8x128xf32>
      %15 = vector.shape_cast %14 : vector<1x8x128xf32> to vector<8x128xf32>
      %c0_8 = arith.constant 0 : index
      %c0_9 = arith.constant 0 : index
      %16 = vector.load %arg14[%c0_8, %c0_9] : memref<1x128xf32, #tpu.memory_space<vmem>>, vector<1x128xf32>
      %17 = vector.broadcast %16 : vector<1x128xf32> to vector<8x128xf32>
      %18 = arith.mulf %15, %17 : vector<8x128xf32>
      %c0_10 = arith.constant 0 : index
      %c0_11 = arith.constant 0 : index
      %19 = vector.load %arg15[%c0_10, %c0_11] : memref<1x128xf32, #tpu.memory_space<vmem>>, vector<1x128xf32>
      %20 = vector.broadcast %19 : vector<1x128xf32> to vector<8x128xf32>
      %21 = arith.addf %18, %20 : vector<8x128xf32>
      %c0_12 = arith.constant 0 : index
      %c0_13 = arith.constant 0 : index
      %22 = vector.load %arg7[%c0_12, %c0_13] : memref<8x128xf32, #tpu.memory_space<vmem>>, vector<8x128xf32>
      tpu.vector_store %arg7[%c0_12, %c0_13], %21 {strides = array<i32>} : memref<8x128xf32, #tpu.memory_space<vmem>>, vector<8x128xf32>,
    } else {
    }
    return
  }
  func.func @transform_0(%arg0: i32) -> (i32, i32) {
    %c0_i32 = arith.constant 0 : i32
    %0 = arith.minsi %arg0, %c0_i32 : i32
    %c0_i32_0 = arith.constant 0 : i32
    %c0_i32_1 = arith.constant 0 : i32
    return %0, %c0_i32_0 : i32, i32
  }
  func.func @transform_1(%arg0: i32) -> (i32, i32) {
    %c0_i32 = arith.constant 0 : i32
    %c0_i32_0 = arith.constant 0 : i32
    %c0_i32_1 = arith.constant 0 : i32
    return %c0_i32, %c0_i32_0 : i32, i32
  }
  func.func @transform_2(%arg0: i32) -> (i32, i32) {
    %c0_i32 = arith.constant 0 : i32
    %c0_i32_0 = arith.constant 0 : i32
    %c0_i32_1 = arith.constant 0 : i32
    return %c0_i32, %c0_i32_0 : i32, i32
  }
  func.func @transform_3(%arg0: i32) -> (i32, i32) {
    %c0_i32 = arith.constant 0 : i32
    %c0_i32_0 = arith.constant 0 : i32
    %c0_i32_1 = arith.constant 0 : i32
    return %c0_i32, %c0_i32_0 : i32, i32
  }
  func.func @transform_4(%arg0: i32) -> (i32, i32) {
    %c0_i32 = arith.constant 0 : i32
    %c0_i32_0 = arith.constant 0 : i32
    %c0_i32_1 = arith.constant 0 : i32
    return %c0_i32, %c0_i32_0 : i32, i32
  }
  func.func @transform_5(%arg0: i32) -> (i32, i32) {
    %c0_i32 = arith.constant 0 : i32
    %c0_i32_0 = arith.constant 0 : i32
    %c0_i32_1 = arith.constant 0 : i32
    return %c0_i32, %c0_i32_0 : i32, i32
  }
  func.func @transform_6(%arg0: i32) -> (i32, i32) {
    %c1_i32 = arith.constant 1 : i32
    %0 = arith.subi %arg0, %c1_i32 : i32
    %c0_i32 = arith.constant 0 : i32
    %1 = arith.maxsi %0, %c0_i32 : i32
    %c0_i32_0 = arith.constant 0 : i32
    %c0_i32_1 = arith.constant 0 : i32
    return %1, %c0_i32_0 : i32, i32
  }
  func.func @transform_7(%arg0: i32) -> (i32, i32) {
    %c0_i32 = arith.constant 0 : i32
    %c0_i32_0 = arith.constant 0 : i32
    %c0_i32_1 = arith.constant 0 : i32
    return %c0_i32, %c0_i32_0 : i32, i32
  }
  func.func @transform_8(%arg0: i32) -> (i32, i32) {
    %c0_i32 = arith.constant 0 : i32
    %c0_i32_0 = arith.constant 0 : i32
    %c0_i32_1 = arith.constant 0 : i32
    return %c0_i32, %c0_i32_0 : i32, i32
  }
  func.func @transform_9(%arg0: i32) -> (i32, i32) {
    %c0_i32 = arith.constant 0 : i32
    %c0_i32_0 = arith.constant 0 : i32
    %c0_i32_1 = arith.constant 0 : i32
    return %c0_i32, %c0_i32_0 : i32, i32
  }
}

</mosaic_0001>

<bundles_post_ra>
// kernel: tpu_custom_call.1
= control target key start
LH: loop header
LB: loop body
LE: loop exit
PB: predicated region body
PF: predicated region fallthrough
CT: control target
= control target key end

     0   :  { %s1407_s0 = inlined_call_operand.hbm [shape: f32[8,128], index: 0, kind: input, shape index: {}]   ;;  %s1408_s1 = inlined_call_operand.vmem [shape: f32[1,128], index: 1, kind: input, shape index: {}]   ;;  %s1409_s2 = inlined_call_operand.vmem [shape: f32[1,32], index: 2, kind: input, shape index: {}]   ;;  %s1410_s3 = inlined_call_operand.vmem [shape: f32[1,32], index: 3, kind: input, shape index: {}]   ;;  %s1411_s4 = inlined_call_operand.vmem [shape: f32[1,32], index: 4, kind: input, shape index: {}]   ;;  %s1412_s5 = inlined_call_operand.vmem [shape: f32[1,32], index: 5, kind: input, shape index: {}]   ;;  %s1413_s6 = inlined_call_operand.hbm [shape: f32[8,128], index: 6, kind: output, shape index: {0}]   ;;  %s1414_s7 = inlined_call_operand.hbm [shape: f32[1,32], index: 7, kind: output, shape index: {1}]   ;;  %s1415_s8 = inlined_call_operand.hbm [shape: f32[1,32], index: 8, kind: output, shape index: {2}]   ;;  %s1416_s9 = inlined_call_operand.hbm [shape: f32[1,32], index: 9, kind: output, shape index: {3}]  }
   0x1   :  { %1424 = sst [smem:[#allocation23_spill]] %s1415_s8 }
   0x2   :  { %1425 = sst [smem:[#allocation24_spill]] %s1416_s9 }
   0x3   :  { %15 = vsyncpa [#allocation8], 0 }
   0x4   :  { %17 = vsyncpa [#allocation8 + $0x1], 0 }
   0x5   :  { %18 = vsyncpa [#allocation9], 0 }
   0x6   :  { %20 = vsyncpa [#allocation9 + $0x1], 0 }
   0x7   :  { %21 = vsyncpa [#allocation12], 0 }
   0x8   :  { %22 = vsyncpa [#allocation15], 0  ;;  %s1085_s30 = smov 0   ;;  %s1087_s10 = smov 0  }
   0x9   :  { %s1089_s11 = smov 0   ;;  %s1091_s12 = smov 0  }
   0xa   :  { %s1093_s13 = smov 0   ;;  %s1095_s14 = smov 0  }
   0xb   :  { %s1097_s15 = smov 0  }
   0xc LB: > { %1426 = sst [smem:[#allocation20_spill]] %s1000_s30  ;;  %s1119_s16 = sadd.s32 4294967295, %s1024_s15   ;;  %s1024_s15 = sphi %s1097_s15, %s1455_s15   ;;  %s1020_s14 = sphi %s1095_s14, %s1462_s14   ;;  %s1016_s13 = sphi %s1093_s13, %s1461_s13   ;;  %s1012_s12 = sphi %s1091_s12, %s1460_s12   ;;  %s1008_s11 = sphi %s1089_s11, %s1459_s11   ;;  %s1004_s10 = sphi %s1087_s10, %s1458_s10   ;;  %s1000_s30 = sphi %s1085_s30, %s1457_s30  }
   0xd   : > { %s686_s17 = sadd.s32 4294967294, %s1024_s15   ;;  %s1123_s18 = sadd.s32 1, %s1024_s15  }
   0xe   : > { %1427 = sst [smem:[#allocation21_spill]] %s1123_s18  ;;  %p32_p0 = scmp.lt.s32.totalorder %s1024_s15, 0 }
   0xf   : > { %p34_p1 = scmp.lt.s32.totalorder %s1123_s18, 0  ;;  %s39_s19 = sadd.s32 1, %s1020_s14 }
  0x10   : > { %s1129_s20 = scalar_select %p32_p0, %s1024_s15, 0 }
  0x11   : > { %s35_s21 = scalar_select %p34_p1, %s1123_s18, 0 }
  0x12   : > { %p46_p2 = scmp.ne.s32.totalorder %s1020_s14, %s1016_s13  ;;  %p47_p3 = scmp.eq.s32.totalorder %s1024_s15, 0 }
  0x13   : > { %s36_s22 = ssub.s32 %s1129_s20, %s35_s21  ;;  %p52_p4 = scmp.ne.s32.totalorder %s1016_s13, %s1012_s12 }
  0x14   : > { %p37_p5 = scmp.eq.s32.totalorder %s36_s22, 0  ;;  %p1137_p6 = por %p47_p3, %p46_p2 }
  0x15   : > { %p53_p7 = scmp.eq.s32.totalorder %s1119_s16, 0  ;;  %p168_p8 = scmp.gt.s32.totalorder %s1119_s16, 0 }
  0x16   : > { %s1144_s24 = scalar_select %p37_p5, %s1020_s14, %s39_s19  }
  0x17   : > { %p1146_p9 = por %p53_p7, %p52_p4  ;;  %s688_s26 = sadd.s32 4294967295, %s1123_s18 }
  0x18   : > { %1429 = sst [smem:[#allocation22_spill]] %s1144_s24  ;;  %p171_p10 = scmp.gt.s32.totalorder %s688_s26, 0 }
  0x19   : > { %s169_s27 = scalar_select %p168_p8, %s1119_s16, 0 }
  0x1a   : > { %s176_s28 = sadd.s32 1, %s1008_s11  ;;  %p186_p11 = scmp.ne.s32.totalorder %s1008_s11, %s1004_s10 }
  0x1b   : > { %p1422_p12 = scmp.eq.s32.totalorder %s1119_s16, 1  ;;  %s1464_s26 = smov (!%p171_p10, %s688_s26), 0 }
  0x1c   : > { %p192_p0 = scmp.ne.s32.totalorder %s1004_s10, %s1000_s30  ;;  %s173_s12 = ssub.s32 %s169_s27, %s1464_s26 }
  0x1d   : > { %p1158_p13 = por %p1422_p12, %p186_p11  ;;  %p193_p1 = scmp.eq.s32.totalorder %s686_s17, 1 }
  0x1e   : > { %p174_p2 = scmp.eq.s32.totalorder %s173_s12, 0  ;;  %p741_p5 = scmp.lt.s32.totalorder %s1024_s15, 2 }
  0x1f   : > { %s1431_s29 = scalar_select %p1158_p13, 1, 0 }
  0x20   : > { %p1165_p4 = por %p193_p1, %p192_p0  ;;  %s291_s22 = sand.u32 1, %s1020_s14  }
  0x21   : > { %s1171_s21 = scalar_select %p174_p2, %s1008_s11, %s176_s28  }
  0x22   : > { %s1432_s19 = scalar_select %p1165_p4, 1, 0 }
  0x23   : > { %s692_s24 = sshll.u32 %s1129_s20, 7  ;;  %s691_s18 = sshll.u32 %s291_s22, 3 }
  0x24   : > { %s1178_s30 = scalar_lea.hbm %s1407_s0, %s692_s24  ;;  %s295_s17 = scalar_lea.vmem [#allocation7], %s691_s18 }
  0x25   : > { %s304_s26 = sshll.u32 %s295_s17, 4  ;;  %p1182_p7 = pnand %p741_p5, %p1137_p6  ;;  %s1186_s26 = int_to_ptr.vmem [resolvable:$true] %s304_s26 }
  0x26   : > { %s292_s8 = scalar_lea.sflag [#allocation8], %s291_s22  ;;  %s818_s9 = scalar_lea.hbm %s1178_s30, 128 }
  0x27   : > { %p819_p11 = scmp.ne.s32.totalorder %s1178_s30, %s818_s9  ;;  %p820_p0 = pneg %p1182_p7 }
  0x28   : > { %s823_s23 = scalar_lea.hbm %s1407_s0, 128  ;;  %p824_p6 = scmp.lt.u32.totalorder %s1178_s30, %s1407_s0 }
  0x29   : > { %p821_p1 = pnand %p820_p0, %p819_p11  ;;  %p825_p5 = scmp.lt.u32.totalorder %s823_s23, %s818_s9 }
  0x2a   : > { %p827_p12 = scmp.lt.u32.totalorder %s818_s9, %s1178_s30 }
  0x2b   : > { %p822_p2 = pneg %p821_p1  ;;  %p826_p3 = por %p825_p5, %p824_p6 }
  0x2d   : > { %p828_p8 = por %p827_p12, %p826_p3 }
  0x2f   : > { %p829_p10 = pnand %p828_p8, %p822_p2 }
  0x31   : > { %832 = shalt.err (!%p829_p10)
}
  0x32   : > { %s833_s12 = scalar_lea.vmem %s1186_s26, 128  ;;  %s1026_s22 = smov [#allocation7]  }
  0x33   : > { %p834_p11 = scmp.ne.s32.totalorder %s1186_s26, %s833_s12  ;;  %s838_s17 = sshll.u32 %s1026_s22, 4  ;;  %s839_s17 = int_to_ptr.vmem [resolvable:$false] %s838_s17 }
  0x34   : > { %s840_s18 = scalar_lea.vmem %s839_s17, 256  ;;  %p841_p13 = scmp.lt.s32.totalorder %s1186_s26, %s839_s17 }
  0x35   : > { %p836_p1 = pnand %p834_p11, %p820_p0  ;;  %p842_p6 = scmp.lt.s32.totalorder %s840_s18, %s833_s12 }
  0x37   : > { %p837_p4 = pneg %p836_p1  ;;  %p843_p5 = por %p842_p6, %p841_p13 }
  0x39   : > { %p844_p12 = pnand %p843_p5, %p837_p4 }
  0x3b   : > { %847 = shalt.err (!%p844_p12)
}
  0x3c   : > { %736 = dma.hbm_to_vmem [thread:$0]  (!%p1182_p7), %s1178_s30, 128, %s1186_s26, %s292_s8  }
  0x3d   : > { %p1434_p3 = scmp.lt.s32.totalorder %s1024_s15, 3  ;;  %p1435_p8 = scmp.ge.s32.totalorder %s1024_s15, 1 }
  0x3f   : > { %p310_p10 = pnand %p1435_p8, %p1434_p3 }
  0x40   : > { %s315_s9 = sand.u32 (!%p310_p10), 1, %s1016_s13  }
  0x41   : > { %313 = sbr.rel (%p310_p10) target bundleno = 512 (0x200), region = 44  ;;  %s694_s20 = sshll.u32 (!%p310_p10), %s315_s9, 3 }
  0x42   : > { %s316_s23 = scalar_lea.sflag (!%p310_p10), [#allocation8], %s315_s9  ;;  %s319_s24 = scalar_lea.vmem (!%p310_p10), [#allocation7], %s694_s20 }
  0x48   : > { %983 = dma.done.wait (%p1146_p9), %s316_s23, 128  }
  0x49   : > { %985 = vsyncadd (%p1146_p9), %s316_s23, 4294967168  ;;  %s345_s27 = sand.u32 1, %s1004_s10   ;;  %p696_p13 = scmp.ne.s32.totalorder %s1119_s16, 0 }
  0x4a   : > { %s1227_s30 = sshll.u32 %s345_s27, 3  ;;  %v1027_v0 = vmov (!%p696_p13), 0.0  }
  0x4b   : > { %s347_s26 = scalar_lea.vmem [#allocation10], %s1227_s30  ;;  %362 = sbr.rel (%p696_p13) target bundleno = 82 (0x52), region = 52  ;;  %363 = vst [vmem:[#allocation3] sm:$0x1] (!%p696_p13), %v1027_v0  ;;  %364 = vst [vmem:[#allocation4] sm:$0x1] (!%p696_p13), %v1027_v0 }
  0x52 PF: > { %p697_p4 = scmp.ge.s32.totalorder %s1119_s16, 1 }
  0x53   : > { %v369_v1 = vld [vmem:[%s319_s24] sm:$0xff] (!%p697_p4)  ;;  %s698_s25 = sshll.u32 (!%p697_p4), %s1119_s16, 3  ;;  %v699_v2 = vld [vmem:[%s1408_s1] ss:$0 sm:$0xff] (!%p697_p4)  ;;  %v381_v14 = vld [vmem:[#allocation3] sm:$0x1] (!%p697_p4) }
  0x54   : > { %368 = sbr.rel (%p697_p4) target bundleno = 103 (0x67), region = 56  ;;  %v380_v3 = vsub.f32 (!%p697_p4), %v369_v1, %v699_v2  ;;  %s371_s12 = scalar_lea.vmem (!%p697_p4), [#allocation2], %s698_s25  ;;  %v390_v17 = vld [vmem:[#allocation4] sm:$0x1] (!%p697_p4) }
  0x55   : > { %372 = vst [vmem:[%s371_s12] sm:$0xff] (!%p697_p4), %v369_v1 }
  0x56   : > { %v382_v4 = vrot.slane (!%p697_p4), %v380_v3, 4  ;;  %v391_v5 = vmul.f32 (!%p697_p4), %v380_v3, %v380_v3 }
  0x58   : > { %v383_v6 = vadd.f32 (!%p697_p4), %v382_v4, %v380_v3  ;;  %v392_v7 = vrot.slane (!%p697_p4), %v391_v5, 4 }
  0x5a   : > { %v384_v8 = vrot.slane (!%p697_p4), %v383_v6, 2  ;;  %v393_v9 = vadd.f32 (!%p697_p4), %v392_v7, %v391_v5 }
  0x5c   : > { %v385_v10 = vadd.f32 %v384_v8, %v383_v6  ;;  %v394_v11 = vrot.slane %v393_v9, 2 }
  0x5e   : > { %v386_v12 = vrot.slane %v385_v10, 1  ;;  %v395_v13 = vadd.f32 %v394_v11, %v393_v9 }
  0x60   : > { %v387_v15 = vadd.f32 %v386_v12, %v385_v10  ;;  %v396_v16 = vrot.slane %v395_v13, 1 }
  0x62   : > { %v388_v18 = vadd.f32 %v387_v15, %v381_v14  ;;  %v397_v19 = vadd.f32 %v396_v16, %v395_v13 }
  0x64   : > { %389 = vst [vmem:[#allocation3] sm:$0x1] %v388_v18  ;;  %v398_v20 = vadd.f32 %v397_v19, %v390_v17 }
  0x66   : > { %399 = vst [vmem:[#allocation4] sm:$0x1] %v398_v20 }
  0x67 PF: > { %402 = sbr.rel (%p696_p13) target bundleno = 387 (0x183), region = 60  ;;  %s1028_s22 = smov (!%p696_p13), 96   ;;  %v405_v31 = vld [vmem:[%s1408_s1] sm:$0x1] (!%p696_p13)  ;;  %vm501_vm0 = vcmask (!%p696_p13), 253952   ;;  %v463_v54 = vlaneseq (!%p696_p13)  ;;  %vm476_vm1 = vcmask (!%p696_p13), 261120  }
  0x68   : > { %s1029_s17 = smov (!%p696_p13), 32   ;;  %s1030_s18 = smov (!%p696_p13), 64   ;;  %v408_v32 = vld [vmem:[%s1411_s4] sm:$0x1] (!%p696_p13)  ;;  %vm478_vm2 = vcmask (!%p696_p13), 523264   ;;  %vm480_vm3 = vcmask (!%p696_p13), 785408  }
  0x69   : > { %v456_v38 = vmul.f32 (!%p696_p13), 0.9, %v408_v32  ;;  %v406_v42 = vld [vmem:[%s1409_s2] sm:$0x1] (!%p696_p13)  ;;  %v464_v55 = vshrl.u32 (!%p696_p13), %v463_v54, 7 }
  0x6a   : > { %v409_v45 = vld [vmem:[%s1412_s5] sm:$0x1] (!%p696_p13)  ;;  %v447_v47 = vmul.f32 (!%p696_p13), 1.442695, %v406_v42 }
  0x6b   : > { %v403_v21 = vld [vmem:[#allocation3] sm:$0x1] (!%p696_p13)  ;;  %v459_v49 = vmul.f32 (!%p696_p13), 0.9, %v409_v45  ;;  %v465_v57 = vsub.s32 (!%p696_p13), 0, %v464_v55 }
  0x6c   : > { %411 = vrot.lane.b32.xlu0 (!%p696_p13), %v403_v21, %s1028_s22  ;;  %419 = vrot.lane.b32.xlu1 (!%p696_p13), %v403_v21, %s1029_s17  ;;  %812 = vpow2.f32 (!%p696_p13), %v447_v47  ;;  %v407_v62 = vld [vmem:[%s1410_s3] sm:$0x1] (!%p696_p13) }
  0x6d   : > { %v404_v22 = vld [vmem:[#allocation4] sm:$0x1] (!%p696_p13) }
  0x70   : > { %415 = vrot.lane.b32.xlu0 %v403_v21, %s1030_s18  ;;  %424 = vrot.lane.b32.xlu1 %v404_v22, %s1028_s22 }
  0x74   : > { %428 = vrot.lane.b32.xlu0 %v404_v22, %s1030_s18  ;;  %432 = vrot.lane.b32.xlu1 %v404_v22, %s1029_s17 }
  0x76   : > { %v813_v56 = vpop.eup %812 }
  0xde   : > { %v412_v23 = vpop.permute.xlu0 %411  ;;  %v420_v24 = vpop.permute.xlu1 %419 }
  0xdf   : > { %v414_v25 = vadd.f32 %v412_v23, %v403_v21 }
  0xe2   : > { %v416_v26 = vpop.permute.xlu0 %415  ;;  %v425_v27 = vpop.permute.xlu1 %424 }
  0xe3   : > { %v418_v28 = vadd.f32 %v416_v26, %v414_v25  ;;  %v427_v29 = vadd.f32 %v425_v27, %v404_v22 }
  0xe5   : > { %v422_v30 = vadd.f32 %v420_v24, %v418_v28 }
  0xe6   : > { %v429_v33 = vpop.permute.xlu0 %428  ;;  %v433_v34 = vpop.permute.xlu1 %432 }
  0xe7   : > { %v437_v35 = vmul.f32 0.0625, %v422_v30  ;;  %v439_v36 = vmul.f32 %v422_v30, %v422_v30  ;;  %v431_v37 = vadd.f32 %v429_v33, %v427_v29 }
  0xe9   : > { %v438_v39 = vadd.f32 %v437_v35, %v405_v31  ;;  %v435_v40 = vadd.f32 %v433_v34, %v431_v37  ;;  %v440_v41 = vmul.f32 0.0625, %v439_v36 }
  0xeb   : > { %v457_v43 = vmul.f32 0.1, %v438_v39  ;;  %v441_v44 = vsub.f32 %v435_v40, %v440_v41 }
  0xed   : > { %v458_v46 = vadd.f32 %v457_v43, %v456_v38  ;;  %v443_v48 = vmul.f32 0.06666667, %v441_v44 }
  0xef   : > { %v444_v50 = vmax.f32 %v443_v48, 0.0  ;;  %503 = vst.msk [vmem:[#allocation13] sm:$0x1] %vm501_vm0, %v458_v46 }
  0xf1   : > { %v445_v51 = vadd.f32 1e-05, %v444_v50  ;;  %v460_v52 = vmul.f32 0.1, %v444_v50 }
  0xf3   : > { %814 = vrsqrt.f32 %v445_v51  ;;  %v461_v53 = vadd.f32 %v460_v52, %v459_v49 }
  0xf4   : > { %816 = vlog2.f32 %v445_v51 }
  0xf5   : > { %504 = vst.msk [vmem:[#allocation14] sm:$0x1] %vm501_vm0, %v461_v53 }
  0xfd   : > { %v815_v58 = vpop.eup %814 }
  0xfe   : > { %v817_v59 = vpop.eup %816  ;;  %v449_v60 = vmul.f32 %v815_v58, %v813_v56 }
  0xff   : > { %v453_v61 = vmul.f32 0.6931472, %v817_v59 }
 0x100   : > { %v466_v63 = vrot.slane %v449_v60, %v465_v57  ;;  %v450_v0 = vmul.f32 %v449_v60, %v438_v39 }
 0x101   : > { %v454_v1 = vmul.f32 0.5, %v453_v61 }
 0x102   : > { %467 = vrot.lane.b32.xlu0 %v466_v63, %s1029_s17  ;;  %v451_v2 = vsub.f32 %v407_v62, %v450_v0 }
 0x103   : > { %v455_v3 = vsub.f32 %v406_v42, %v454_v1 }
 0x104   : > { %v486_v4 = vrot.slane %v451_v2, %v465_v57 }
 0x105   : > { %502 = vst.msk [vmem:[#allocation11] sm:$0x1] %vm501_vm0, %v455_v3 }
 0x106   : > { %470 = vrot.lane.b32.xlu0 %v466_v63, %s1030_s18  ;;  %487 = vrot.lane.b32.xlu1 %v486_v4, %s1029_s17 }
 0x10a   : > { %473 = vrot.lane.b32.xlu0 %v466_v63, %s1028_s22  ;;  %490 = vrot.lane.b32.xlu1 %v486_v4, %s1030_s18 }
 0x10e   : > { %493 = vrot.lane.b32.xlu1 %v486_v4, %s1028_s22 }
 0x174   : > { %v468_v5 = vpop.permute.xlu0 %467 }
 0x175   : > { %v477_v8 = vsel %vm476_vm1, %v449_v60, %v468_v5 }
 0x178   : > { %v471_v6 = vpop.permute.xlu0 %470  ;;  %v488_v7 = vpop.permute.xlu1 %487 }
 0x179   : > { %v479_v9 = vsel %vm478_vm2, %v477_v8, %v471_v6  ;;  %v496_v13 = vsel %vm476_vm1, %v451_v2, %v488_v7 }
 0x17c   : > { %v474_v10 = vpop.permute.xlu0 %473  ;;  %v491_v11 = vpop.permute.xlu1 %490 }
 0x17d   : > { %v481_v12 = vsel %vm480_vm3, %v479_v9, %v474_v10  ;;  %v497_v14 = vsel %vm478_vm2, %v496_v13, %v491_v11 }
 0x17e   : > { %499 = vst [vmem:[#allocation5] sm:$0x1] %v481_v12 }
 0x180   : > { %v494_v15 = vpop.permute.xlu1 %493 }
 0x181   : > { %v498_v16 = vsel %vm480_vm3, %v497_v14, %v494_v15 }
 0x182   : > { %500 = vst [vmem:[#allocation6] sm:$0x1] %v498_v16 }
 0x183 PF: > { %p701_p9 = scmp.lt.s32.totalorder %s1119_s16, 1 }
 0x184   : > { %s702_s22 = sadd.s32 (!%p701_p9), 4294967295, %s1119_s16 }
 0x185   : > { %508 = sbr.rel (%p701_p9) target bundleno = 397 (0x18d), region = 64  ;;  %s703_s17 = sshll.u32 (!%p701_p9), %s702_s22, 3  ;;  %v704_v17 = vld [vmem:[#allocation5] ss:$0 sm:$0xff] (!%p701_p9) }
 0x186   : > { %s511_s18 = scalar_lea.vmem (!%p701_p9), [#allocation2], %s703_s17 }
 0x187   : > { %v512_v18 = vld [vmem:[%s511_s18] sm:$0xff] (!%p701_p9) }
 0x188   : > { %v520_v20 = vmul.f32 (!%p701_p9), %v704_v17, %v512_v18 }
 0x189   : > { %v705_v19 = vld [vmem:[#allocation6] ss:$0 sm:$0xff] (!%p701_p9) }
 0x18a   : > { %v528_v21 = vadd.f32 (!%p701_p9), %v705_v19, %v520_v20 }
 0x18c   : > { %529 = vst [vmem:[%s347_s26] sm:$0xff] %v528_v21 }
 0x18d PF: > { %s1031_s23 = smov [#allocation11]   ;;  %s707_s25 = sadd.s32 4294967295, %s1119_s16 }
 0x18e   : > { %s558_s24 = sshll.u32 %s1031_s23, 4  ;;  %p1436_p0 = scmp.eq.s32.totalorder %s1119_s16, 1  ;;  %s559_s24 = int_to_ptr.vmem [resolvable:$true] %s558_s24 }
 0x18f   : > { %s848_s8 = scalar_lea.vmem %s559_s24, 16  ;;  %s854_s28 = scalar_lea.vmem %s559_s24, 32 }
 0x190   : > { %p849_p7 = scmp.ne.s32.totalorder %s559_s24, %s848_s8  ;;  %p855_p1 = scmp.lt.s32.totalorder %s559_s24, %s559_s24 }
 0x191   : > { %p856_p6 = scmp.lt.s32.totalorder %s854_s28, %s848_s8 }
 0x192   : > { %p850_p2 = pnand %p849_p7, %p1436_p0 }
 0x193   : > { %p857_p5 = por %p856_p6, %p855_p1 }
 0x194   : > { %p851_p11 = pneg %p850_p2 }
 0x196   : > { %p858_p12 = pnand %p857_p5, %p851_p11 }
 0x198   : > { %861 = shalt.err (!%p858_p12)
}
 0x199   : > { %s862_s20 = scalar_lea.hbm %s1414_s7, 16  ;;  %p1437_p8 = pmov %p1436_p0 }
 0x19a   : > { %p863_p3 = scmp.ne.s32.totalorder %s1414_s7, %s862_s20  ;;  %p868_p4 = scmp.lt.u32.totalorder %s862_s20, %s1414_s7 }
 0x19c   : > { %p864_p10 = pnand %p863_p3, %p1437_p8 }
 0x19e   : > { %p865_p13 = pneg %p864_p10 }
 0x1a0   : > { %p870_p9 = pnand %p868_p4, %p865_p13 }
 0x1a2   : > { %873 = shalt.err (!%p870_p9)
}
 0x1a3   : > { %p1438_p7 = pmov %p1436_p0  ;;  %p539_p0 = scmp.gt.s32.totalorder %s707_s25, 0 }
 0x1a4   : > { %s547_s12 = sshll.u32 %s347_s26, 4  ;;  %s1032_s9 = smov [#allocation13]   ;;  %s1295_s12 = int_to_ptr.vmem [resolvable:$true] %s547_s12 }
 0x1a5   : > { %721 = dma.vmem_to_hbm [thread:$0]  (%p1438_p7), %s559_s24, 16, %s1414_s7, [#allocation12]  }
 0x1a6   : > { %s1466_s25 = smov (!%p539_p0, %s707_s25), 0  ;;  %s569_s20 = sshll.u32 %s1032_s9, 4  ;;  %s1297_s20 = int_to_ptr.vmem [resolvable:$true] %s569_s20 }
 0x1a7   : > { %s708_s22 = sshll.u32 %s1466_s25, 7  ;;  %s1033_s24 = smov [#allocation14]  }
 0x1a8   : > { %s1302_s23 = scalar_lea.hbm %s1413_s6, %s708_s22  ;;  %s1304_s8 = sshll.u32 %s1033_s24, 4  ;;  %s581_s8 = int_to_ptr.vmem [resolvable:$true] %s1304_s8 }
 0x1a9   : > { %s531_s30 = scalar_lea.sflag [#allocation9], %s345_s27  ;;  %s874_s26 = scalar_lea.vmem %s1295_s12, 128 }
 0x1aa   : > { %p875_p2 = scmp.ne.s32.totalorder %s1295_s12, %s874_s26  ;;  %p1439_p11 = scmp.ne.s32.totalorder %s1431_s29, 0 }
 0x1ab   : > { %s1034_s28 = smov [#allocation10]  }
 0x1ac   : > { %p876_p1 = pnand %p875_p2, %p1439_p11  ;;  %s878_s9 = sshll.u32 %s1034_s28, 4  ;;  %s879_s9 = int_to_ptr.vmem [resolvable:$false] %s878_s9 }
 0x1ad   : > { %s880_s25 = scalar_lea.vmem %s879_s9, 256  ;;  %p881_p5 = scmp.lt.s32.totalorder %s1295_s12, %s879_s9 }
 0x1ae   : > { %p877_p6 = pneg %p876_p1  ;;  %p882_p12 = scmp.lt.s32.totalorder %s880_s25, %s874_s26 }
 0x1b0   : > { %p883_p3 = por %p882_p12, %p881_p5 }
 0x1b2   : > { %p884_p8 = pnand %p883_p3, %p877_p6 }
 0x1b4   : > { %887 = shalt.err (!%p884_p8)
}
 0x1b5   : > { %s888_s27 = scalar_lea.hbm %s1302_s23, 128  ;;  %s892_s18 = scalar_lea.hbm %s1413_s6, 128 }
 0x1b6   : > { %p889_p10 = scmp.ne.s32.totalorder %s1302_s23, %s888_s27  ;;  %p893_p9 = scmp.lt.u32.totalorder %s1302_s23, %s1413_s6 }
 0x1b7   : > { %p894_p7 = scmp.lt.u32.totalorder %s892_s18, %s888_s27  ;;  %p896_p2 = scmp.lt.u32.totalorder %s888_s27, %s1302_s23 }
 0x1b8   : > { %p890_p13 = pnand %p889_p10, %p1439_p11 }
 0x1b9   : > { %p895_p0 = por %p894_p7, %p893_p9 }
 0x1ba   : > { %p891_p4 = pneg %p890_p13 }
 0x1bb   : > { %p897_p1 = por %p896_p2, %p895_p0 }
 0x1bd   : > { %p898_p6 = pnand %p897_p1, %p891_p4 }
 0x1bf   : > { %901 = shalt.err (!%p898_p6)
}
 0x1c0   : > { %719 = dma.vmem_to_hbm [thread:$0]  (%p1439_p11), %s1295_s12, 128, %s1302_s23, %s531_s30  }
 0x1c1   : > { %s902_s26 = scalar_lea.vmem %s1297_s20, 16  ;;  %p1440_p12 = scmp.eq.s32.totalorder %s1119_s16, 1 }
 0x1c2   : > { %p903_p5 = scmp.ne.s32.totalorder %s1297_s20, %s902_s26  ;;  %s908_s9 = scalar_lea.vmem %s1297_s20, 32 }
 0x1c3   : > { %p909_p10 = scmp.lt.s32.totalorder %s1297_s20, %s1297_s20  ;;  %p910_p13 = scmp.lt.s32.totalorder %s908_s9, %s902_s26 }
 0x1c4   : > { %p904_p3 = pnand %p903_p5, %p1440_p12 }
 0x1c5   : > { %p911_p4 = por %p910_p13, %p909_p10 }
 0x1c6   : > { %p905_p8 = pneg %p904_p3 }
 0x1c8   : > { %p912_p9 = pnand %p911_p4, %p905_p8 }
 0x1ca   : > { %915 = shalt.err (!%p912_p9)
}
 0x1cb   : > { %s1441_s27 = sld [smem:[#allocation23_spill]]  ;;  %p1442_p7 = pmov %p1440_p12 }
 0x1d1   : > { %s916_s22 = scalar_lea.hbm %s1441_s27, 16 }
 0x1d2   : > { %p917_p11 = scmp.ne.s32.totalorder %s1441_s27, %s916_s22  ;;  %p922_p1 = scmp.lt.u32.totalorder %s916_s22, %s1441_s27 }
 0x1d4   : > { %p918_p0 = pnand %p917_p11, %p1442_p7 }
 0x1d6   : > { %p919_p2 = pneg %p918_p0 }
 0x1d8   : > { %p924_p6 = pnand %p922_p1, %p919_p2 }
 0x1da   : > { %927 = shalt.err (!%p924_p6)
}
 0x1db   : > { %p1443_p5 = pmov %p1442_p7  ;;  %s928_s28 = scalar_lea.vmem %s581_s8, 16 }
 0x1dc   : > { %p929_p12 = scmp.ne.s32.totalorder %s581_s8, %s928_s28  ;;  %s934_s26 = scalar_lea.vmem %s581_s8, 32 }
 0x1dd   : > { %723 = dma.vmem_to_hbm [thread:$0]  (%p1443_p5), %s1297_s20, 16, %s1441_s27, [#allocation12]  }
 0x1de   : > { %p1444_p3 = pmov %p1443_p5  ;;  %p935_p13 = scmp.lt.s32.totalorder %s581_s8, %s581_s8 }
 0x1df   : > { %p936_p4 = scmp.lt.s32.totalorder %s934_s26, %s928_s28 }
 0x1e0   : > { %p930_p8 = pnand %p929_p12, %p1444_p3 }
 0x1e1   : > { %p937_p9 = por %p936_p4, %p935_p13 }
 0x1e2   : > { %p931_p10 = pneg %p930_p8 }
 0x1e4   : > { %p938_p11 = pnand %p937_p9, %p931_p10 }
 0x1e6   : > { %941 = shalt.err (!%p938_p11)
}
 0x1e7   : > { %s1445_s25 = sld [smem:[#allocation24_spill]]  ;;  %p1446_p0 = pmov %p1444_p3 }
 0x1ed   : > { %s942_s22 = scalar_lea.hbm %s1445_s25, 16 }
 0x1ee   : > { %p943_p7 = scmp.ne.s32.totalorder %s1445_s25, %s942_s22  ;;  %p948_p6 = scmp.lt.u32.totalorder %s942_s22, %s1445_s25 }
 0x1f0   : > { %p944_p2 = pnand %p943_p7, %p1446_p0 }
 0x1f2   : > { %p945_p1 = pneg %p944_p2 }
 0x1f4   : > { %p950_p5 = pnand %p948_p6, %p945_p1 }
 0x1f6   : > { %953 = shalt.err (!%p950_p5)
}
 0x1f7   : > { %p1447_p12 = pmov %p1446_p0  ;;  %p1448_p3 = pmov %p1446_p0 }
 0x1f9   : > { %725 = dma.vmem_to_hbm [thread:$0]  (%p1447_p12), %s581_s8, 16, %s1445_s25, [#allocation15]  }
 0x1fa   : > { %987 = dma.done.wait (%p1448_p3), [#allocation12], 32   ;;  %p1449_p8 = pmov %p1446_p0 }
 0x1fb   : > { %p1450_p10 = pmov %p1446_p0 }
 0x1fc   : > { %989 = vsyncadd (%p1449_p8), [#allocation12], 4294967264 }
 0x1fd   : > { %991 = dma.done.wait (%p1450_p10), [#allocation15], 16   ;;  %p1451_p13 = pmov %p1446_p0 }
 0x1ff   : > { %993 = vsyncadd (%p1451_p13), [#allocation15], 4294967280 }
 0x200 PF: > { %s1452_s24 = sld [smem:[#allocation20_spill]]  ;;  %p1453_p4 = scmp.ne.s32.totalorder %s1432_s19, 0 }
 0x201   : > { %p1454_p9 = scmp.ge.s32.totalorder %s1024_s15, 2 }
 0x203   : > { %p738_p11 = pnand %p1454_p9, %p1453_p4 }
 0x206   : > { %s604_s28 = sand.u32 1, %s1452_s24  }
 0x207   : > { %s605_s8 = scalar_lea.sflag [#allocation9], %s604_s28 }
 0x208   : > { %995 = dma.done.wait (!%p738_p11), %s605_s8, 128  }
 0x209   : > { %997 = vsyncadd (!%p738_p11), %s605_s8, 4294967168  ;;  %s1455_s15 = sld [smem:[#allocation21_spill]]  ;;  %s1456_s26 = sld [smem:[#allocation22_spill]] }
 0x20a   : > { %s1457_s30 = smov %s1004_s10  ;;  %s1458_s10 = smov %s1008_s11 }
 0x20b   : > { %s1459_s11 = smov %s1171_s21  ;;  %s1460_s12 = smov %s1016_s13 }
 0x20c   : > { %s1461_s13 = smov %s1020_s14 }
 0x20f   : > { %p25_p7 = scmp.ge.s32.totalorder %s1455_s15, 4   ;;  %s1462_s14 = smov %s1456_s26 }
 0x211   :  { %27 = sbr.rel (!%p25_p7) target bundleno = 12 (0xc), region = 131 }
 0x218   :  { %610 = vsyncpa [#allocation8], 1 }
 0x219   :  { %612 = vsyncpa [#allocation8 + $0x1], 1 }
 0x21a   :  { %613 = vsyncpa [#allocation9], 1 }
 0x21b   :  { %615 = vsyncpa [#allocation9 + $0x1], 1 }
 0x21c   :  { %616 = vsyncpa [#allocation12], 1 }
 0x21d   :  { %617 = vsyncpa [#allocation15], 1 }

</bundles_post_ra>
